<compile_context>
chip_gen: v7x
topology: tpu7x:2x2x1
jax: 0.10.0
libtpu: 0.0.40
codegen_flags: <defaults>
</compile_context>

<pallas_src>
import jax
import jax.numpy as jnp
from jax.experimental import pallas as pl
from jax.experimental.pallas import tpu as pltpu


def _round_up(n: int, m: int) -> int:
    return ((n + m - 1) // m) * m


def mlp_blackbox_kernel(x_ref,
                        w1_ref, b1_ref,
                        w2_ref, b2_ref,
                        w3_ref, b3_ref,
                        wd_ref, bd_ref,
                        out_ref):
    cdt = w1_ref.dtype  # matmul operand dtype (bf16 fast path / f32 exact path)

    # fc1 + ReLU: MXU matmul with f32 accumulate; bias + ReLU in f32, then the
    # result is rounded to the compute dtype in the same elementwise pass so the
    # (bb, 512) intermediate only ever lands in VMEM at the compute dtype.
    h = jnp.dot(x_ref[...], w1_ref[...], preferred_element_type=jnp.float32)
    h = jnp.maximum(h + b1_ref[...], 0.0).astype(cdt)
    # fc2 + ReLU
    h = jnp.dot(h, w2_ref[...], preferred_element_type=jnp.float32)
    h = jnp.maximum(h + b2_ref[...], 0.0).astype(cdt)
    # fc3 + ReLU (kept in f32: only (bb, 32), feeds the final f32 reduction)
    h = jnp.dot(h, w3_ref[...], preferred_element_type=jnp.float32)
    h = jnp.maximum(h + b3_ref[...], 0.0)

    # fc4 + softmax(dim=1) over 2 classes, rewritten algebraically:
    #   softmax([l0, l1]) == [sigmoid(d), 1 - sigmoid(d)],  d = l0 - l1.
    # Only d = h @ (w4[:,0]-w4[:,1]) + (b4[0]-b4[1]) is needed: an f32 VPU
    # multiply + K=32 lane reduce, so the N=2 MXU matmul, the cross-lane
    # max/sum and the extra exponentials disappear.  The sigmoid runs on the
    # single-lane column; the 2-class output is assembled with an iota select
    # (no captured array constants).
    d = jnp.sum(h * wd_ref[...], axis=1, keepdims=True) + bd_ref[...]   # (bb, 1)
    ed = jnp.exp(-jnp.abs(d))                                           # stable sigmoid
    p0 = jnp.where(d >= 0.0, 1.0, ed) / (1.0 + ed)                      # sigmoid(d), (bb, 1)
    lane = jax.lax.broadcasted_iota(jnp.int32, out_ref.shape, 1)        # (bb, 2): 0,1
    out_ref[...] = jnp.where(lane == 0, p0, 1.0 - p0).astype(out_ref.dtype)


def mlp_blackbox_forward(x, params, *, block_b=1024, compute_dtype=jnp.bfloat16):
    """Fused MLP_BLACKBOX forward. x: any shape flattening to (-1, dim_in).

    Returns (B, 2) float32 class probabilities (softmax over dim=1).
    """
    (w1, b1), (w2, b2), (w3, b3), (w4, b4) = params
    dim_in = w1.shape[0]
    d1, d2, d3 = w1.shape[1], w2.shape[1], w3.shape[1]      # 512, 128, 32

    # --- glue: same as x.view(-1, dim_in) ---
    x2d = jnp.asarray(x, jnp.float32).reshape(-1, dim_in)
    B = x2d.shape[0]

    # --- batch tiling: one tall tile if the batch fits (no forced split on
    #     single-TC v5e/v6e); split only when B exceeds block_b, which keeps
    #     every shard large enough to feed the MXU / a v7x core. ---
    block_b = max(8, (int(block_b) // 8) * 8)
    B8 = _round_up(B, 8)
    if B8 <= block_b:
        n_steps, bb = 1, B8
    else:
        n_steps = pl.cdiv(B8, block_b)
        bb = _round_up(pl.cdiv(B8, n_steps), 8)
    B_pad = bb * n_steps
    if B_pad != B:
        x2d = jnp.pad(x2d, ((0, B_pad - B), (0, 0)))

    # --- one-time casts in the wrapper (not per grid step) ---
    x2d = x2d.astype(compute_dtype)
    w1c, w2c, w3c = (w.astype(compute_dtype) for w in (w1, w2, w3))
    b1r, b2r, b3r = (b.reshape(1, -1).astype(jnp.float32) for b in (b1, b2, b3))
    # 2-class softmax == sigmoid of the logit difference: precompute diff row/bias in f32
    wd = (w4[:, 0] - w4[:, 1]).reshape(1, -1).astype(jnp.float32)       # (1, 32)
    bd = (b4[0] - b4[1]).reshape(1, 1).astype(jnp.float32)              # (1, 1)

    const = lambda shape: pl.BlockSpec(shape, lambda i: (0, 0))
    op_bytes = jnp.dtype(compute_dtype).itemsize
    weight_bytes = ((w1c.size + w2c.size + w3c.size) * op_bytes
                    + (b1r.size + b2r.size + b3r.size + wd.size + bd.size) * 4)
    flops = 2 * B_pad * (dim_in * d1 + d1 * d2 + d2 * d3 + d3 * 1)
    bytes_accessed = B_pad * dim_in * op_bytes + weight_bytes + B_pad * 2 * 4
    # VMEM budget: double-buffered x/out tiles + resident weights + intermediates
    vmem_est = (2 * bb * dim_in * op_bytes + 2 * bb * 2 * 4 + weight_bytes
                + bb * (d1 + d2) * op_bytes + bb * (d3 + 4) * 4)
    vmem_limit = int(min(max(2 * vmem_est + (4 << 20), 16 << 20), 48 << 20))

    out = pl.pallas_call(
        mlp_blackbox_kernel,
        out_shape=jax.ShapeDtypeStruct((B_pad, 2), jnp.float32),
        grid_spec=pltpu.PrefetchScalarGridSpec(
            num_scalar_prefetch=0,
            grid=(n_steps,),
            in_specs=[
                pl.BlockSpec((bb, dim_in), lambda i: (i, 0)),   # streamed x tile
                const(w1c.shape), const(b1r.shape),             # resident weights/biases
                const(w2c.shape), const(b2r.shape),
                const(w3c.shape), const(b3r.shape),
                const(wd.shape), const(bd.shape),
            ],
            out_specs=pl.BlockSpec((bb, 2), lambda i: (i, 0)),
        ),
        compiler_params=pltpu.CompilerParams(
            dimension_semantics=("parallel",),
            vmem_limit_bytes=vmem_limit),
        cost_estimate=pl.CostEstimate(
            flops=flops, transcendentals=B_pad, bytes_accessed=bytes_accessed),
    )(x2d, w1c, b1r, w2c, b2r, w3c, b3r, wd, bd)

    return out[:B]


def init_params(key, dim_in):
    """Deterministic synthetic init (shapes match MLP_BLACKBOX.__init__)."""
    dims = [dim_in, 512, 128, 32, 2]
    params = []
    for i in range(4):
        key, kw, kb = jax.random.split(key, 3)
        fan_in, fan_out = dims[i], dims[i + 1]
        bound = 1.0 / jnp.sqrt(fan_in)
        w = jax.random.uniform(kw, (fan_in, fan_out), jnp.float32, -bound, bound)
        b = jax.random.uniform(kb, (fan_out,), jnp.float32, -bound, bound)
        params.append((w, b))
    return params


def reference_forward(x, params):
    """Pure-JAX reference of the PyTorch forward."""
    (w1, b1), (w2, b2), (w3, b3), (w4, b4) = params
    h = x.reshape(-1, w1.shape[0]).astype(jnp.float32)
    h = jax.nn.relu(h @ w1 + b1)
    h = jax.nn.relu(h @ w2 + b2)
    h = jax.nn.relu(h @ w3 + b3)
    return jax.nn.softmax(h @ w4 + b4, axis=1)


if __name__ == "__main__":
    key = jax.random.PRNGKey(0)
    dim_in = 16      # MLP_BLACKBOX(dim_in=16)
    batch = 8

    kx, kp, kx2 = jax.random.split(key, 3)
    x = jax.random.normal(kx, (batch, dim_in), jnp.float32)
    params = init_params(kp, dim_in)
    ref = reference_forward(x, params)

    # 1) exact path: f32 operands everywhere.  Tolerance covers TPU MXU default
    #    matmul precision plus the (algebraically exact) 2-class softmax->sigmoid
    #    reformulation, which reorders f32 ops in the last layer.
    out_f32 = jax.block_until_ready(
        mlp_blackbox_forward(x, params, compute_dtype=jnp.float32))
    assert out_f32.shape == (batch, 2)
    assert jnp.allclose(out_f32, ref, atol=1e-3, rtol=1e-3), "f32 mismatch vs reference"
    assert jnp.allclose(jnp.sum(out_f32, axis=1), 1.0, atol=1e-5), "rows must sum to 1"

    # 2) fast path (default): bf16 operands / f32 accumulate (v6e/v7x MXU rate).
    out_bf16 = jax.block_until_ready(mlp_blackbox_forward(x, params))
    assert out_bf16.shape == (batch, 2)
    assert jnp.allclose(out_bf16, ref, atol=3e-2, rtol=3e-2), "bf16 mismatch vs reference"
    assert jnp.allclose(jnp.sum(out_bf16, axis=1), 1.0, atol=1e-3), "rows must sum to 1"

    # 3) ragged batch: exercises pad-to-tile + multi-step parallel grid path.
    x2 = jax.random.normal(kx2, (83, dim_in), jnp.float32)
    out2 = jax.block_until_ready(
        mlp_blackbox_forward(x2, params, block_b=32, compute_dtype=jnp.float32))
    ref2 = reference_forward(x2, params)
    assert out2.shape == (83, 2)
    assert jnp.allclose(out2, ref2, atol=1e-3, rtol=1e-3), "ragged-batch mismatch"

    print("KERNEL_OK")
</pallas_src>

<mosaic_0001>
module attributes {stable_mosaic.version = 11 : i64} {
  func.func @mlp_blackbox_kernel(%arg0: i32, %arg1: memref<8x16xf32, #tpu.memory_space<vmem>>, %arg2: memref<16x512xf32, #tpu.memory_space<vmem>>, %arg3: memref<1x512xf32, #tpu.memory_space<vmem>>, %arg4: memref<512x128xf32, #tpu.memory_space<vmem>>, %arg5: memref<1x128xf32, #tpu.memory_space<vmem>>, %arg6: memref<128x32xf32, #tpu.memory_space<vmem>>, %arg7: memref<1x32xf32, #tpu.memory_space<vmem>>, %arg8: memref<1x32xf32, #tpu.memory_space<vmem>>, %arg9: memref<1x1xf32, #tpu.memory_space<vmem>>, %arg10: memref<8x2xf32, #tpu.memory_space<vmem>>) attributes {dimension_semantics = [#tpu.dimension_semantics<parallel>], iteration_bounds = array<i64: 1>, scalar_prefetch = 0 : i64, scratch_operands = 0 : i64, tpu.core_type = #tpu.core_type<tc>, window_params = [{transform_indices = @transform_0, window_bounds = array<i64: 8, 16>}, {pipeline_mode = #tpu.pipeline_mode<synchronous>, transform_indices = @transform_1, window_bounds = array<i64: 16, 512>}, {pipeline_mode = #tpu.pipeline_mode<synchronous>, transform_indices = @transform_2, window_bounds = array<i64: 1, 512>}, {pipeline_mode = #tpu.pipeline_mode<synchronous>, transform_indices = @transform_3, window_bounds = array<i64: 512, 128>}, {pipeline_mode = #tpu.pipeline_mode<synchronous>, transform_indices = @transform_4, window_bounds = array<i64: 1, 128>}, {pipeline_mode = #tpu.pipeline_mode<synchronous>, transform_indices = @transform_5, window_bounds = array<i64: 128, 32>}, {pipeline_mode = #tpu.pipeline_mode<synchronous>, transform_indices = @transform_6, window_bounds = array<i64: 1, 32>}, {pipeline_mode = #tpu.pipeline_mode<synchronous>, transform_indices = @transform_7, window_bounds = array<i64: 1, 32>}, {pipeline_mode = #tpu.pipeline_mode<synchronous>, transform_indices = @transform_8, window_bounds = array<i64: 1, 1>}, {transform_indices = @transform_9, window_bounds = array<i64: 8, 2>}]} {
    %c0 = arith.constant 0 : index
    %c0_0 = arith.constant 0 : index
    %0 = vector.load %arg1[%c0, %c0_0] : memref<8x16xf32, #tpu.memory_space<vmem>>, vector<8x16xf32>
    %c0_1 = arith.constant 0 : index
    %c0_2 = arith.constant 0 : index
    %1 = vector.load %arg2[%c0_1, %c0_2] : memref<16x512xf32, #tpu.memory_space<vmem>>, vector<16x512xf32>
    %cst = arith.constant dense<0.000000e+00> : vector<8x512xf32>
    %2 = tpu.matmul %0, %1, %cst {dimension_numbers = #tpu.dot_dimension_numbers<[1], [0], [0], [1], [0, 0, 1, 1], [], []>} : vector<8x16xf32>, vector<16x512xf32>, vector<8x512xf32> -> vector<8x512xf32>
    %c0_3 = arith.constant 0 : index
    %c0_4 = arith.constant 0 : index
    %3 = vector.load %arg3[%c0_3, %c0_4] : memref<1x512xf32, #tpu.memory_space<vmem>>, vector<1x512xf32>
    %4 = vector.broadcast %3 : vector<1x512xf32> to vector<8x512xf32>
    %5 = arith.addf %2, %4 : vector<8x512xf32>
    %cst_5 = arith.constant 0.000000e+00 : f32
    %6 = vector.broadcast %cst_5 : f32 to vector<8x512xf32>
    %7 = arith.maximumf %5, %6 : vector<8x512xf32>
    %c0_6 = arith.constant 0 : index
    %c0_7 = arith.constant 0 : index
    %8 = vector.load %arg4[%c0_6, %c0_7] : memref<512x128xf32, #tpu.memory_space<vmem>>, vector<512x128xf32>
    %cst_8 = arith.constant dense<0.000000e+00> : vector<8x128xf32>
    %9 = tpu.matmul %7, %8, %cst_8 {dimension_numbers = #tpu.dot_dimension_numbers<[1], [0], [0], [1], [0, 0, 1, 1], [], []>} : vector<8x512xf32>, vector<512x128xf32>, vector<8x128xf32> -> vector<8x128xf32>
    %c0_9 = arith.constant 0 : index
    %c0_10 = arith.constant 0 : index
    %10 = vector.load %arg5[%c0_9, %c0_10] : memref<1x128xf32, #tpu.memory_space<vmem>>, vector<1x128xf32>
    %11 = vector.broadcast %10 : vector<1x128xf32> to vector<8x128xf32>
    %12 = arith.addf %9, %11 : vector<8x128xf32>
    %cst_11 = arith.constant 0.000000e+00 : f32
    %13 = vector.broadcast %cst_11 : f32 to vector<8x128xf32>
    %14 = arith.maximumf %12, %13 : vector<8x128xf32>
    %c0_12 = arith.constant 0 : index
    %c0_13 = arith.constant 0 : index
    %15 = vector.load %arg6[%c0_12, %c0_13] : memref<128x32xf32, #tpu.memory_space<vmem>>, vector<128x32xf32>
    %cst_14 = arith.constant dense<0.000000e+00> : vector<8x32xf32>
    %16 = tpu.matmul %14, %15, %cst_14 {dimension_numbers = #tpu.dot_dimension_numbers<[1], [0], [0], [1], [0, 0, 1, 1], [], []>} : vector<8x128xf32>, vector<128x32xf32>, vector<8x32xf32> -> vector<8x32xf32>
    %c0_15 = arith.constant 0 : index
    %c0_16 = arith.constant 0 : index
    %17 = vector.load %arg7[%c0_15, %c0_16] : memref<1x32xf32, #tpu.memory_space<vmem>>, vector<1x32xf32>
    %18 = vector.broadcast %17 : vector<1x32xf32> to vector<8x32xf32>
    %19 = arith.addf %16, %18 : vector<8x32xf32>
    %cst_17 = arith.constant 0.000000e+00 : f32
    %20 = vector.broadcast %cst_17 : f32 to vector<8x32xf32>
    %21 = arith.maximumf %19, %20 : vector<8x32xf32>
    %c0_18 = arith.constant 0 : index
    %c0_19 = arith.constant 0 : index
    %22 = vector.load %arg8[%c0_18, %c0_19] : memref<1x32xf32, #tpu.memory_space<vmem>>, vector<1x32xf32>
    %23 = vector.broadcast %22 : vector<1x32xf32> to vector<8x32xf32>
    %24 = arith.mulf %21, %23 : vector<8x32xf32>
    %cst_20 = arith.constant dense<0.000000e+00> : vector<8xf32>
    %25 = vector.multi_reduction <add>, %24, %cst_20 [1] : vector<8x32xf32> to vector<8xf32>
    %26 = vector.shape_cast %25 : vector<8xf32> to vector<8x1xf32>
    %c0_21 = arith.constant 0 : index
    %c0_22 = arith.constant 0 : index
    %27 = vector.load %arg9[%c0_21, %c0_22] : memref<1x1xf32, #tpu.memory_space<vmem>>, vector<1x1xf32>
    %28 = vector.broadcast %27 : vector<1x1xf32> to vector<8x1xf32>
    %29 = arith.addf %26, %28 : vector<8x1xf32>
    %30 = math.absf %29 : vector<8x1xf32>
    %cst_23 = arith.constant 0.000000e+00 : f32
    %31 = vector.broadcast %cst_23 : f32 to vector<8x1xf32>
    %32 = arith.subf %31, %30 : vector<8x1xf32>
    %33 = math.exp %32 : vector<8x1xf32>
    %cst_24 = arith.constant 0.000000e+00 : f32
    %34 = vector.broadcast %cst_24 : f32 to vector<8x1xf32>
    %35 = arith.cmpf oge, %29, %34 : vector<8x1xf32>
    %cst_25 = arith.constant 1.000000e+00 : f32
    %36 = vector.broadcast %cst_25 : f32 to vector<8x1xf32>
    %37 = arith.select %35, %36, %33 : vector<8x1xi1>, vector<8x1xf32>
    %cst_26 = arith.constant 1.000000e+00 : f32
    %38 = vector.broadcast %cst_26 : f32 to vector<8x1xf32>
    %39 = arith.addf %38, %33 : vector<8x1xf32>
    %40 = arith.divf %37, %39 : vector<8x1xf32>
    %41 = tpu.iota {dimensions = array<i32: 1>} : vector<8x2xi32>
    %c0_i32 = arith.constant 0 : i32
    %42 = vector.broadcast %c0_i32 : i32 to vector<8x2xi32>
    %43 = arith.cmpi eq, %41, %42 : vector<8x2xi32>
    %cst_27 = arith.constant 1.000000e+00 : f32
    %44 = vector.broadcast %cst_27 : f32 to vector<8x1xf32>
    %45 = arith.subf %44, %40 : vector<8x1xf32>
    %46 = vector.shape_cast %40 : vector<8x1xf32> to vector<8x1xf32>
    %47 = vector.broadcast %46 : vector<8x1xf32> to vector<8x2xf32>
    %48 = vector.shape_cast %45 : vector<8x1xf32> to vector<8x1xf32>
    %49 = vector.broadcast %48 : vector<8x1xf32> to vector<8x2xf32>
    %50 = arith.select %43, %47, %49 : vector<8x2xi1>, vector<8x2xf32>
    %c0_28 = arith.constant 0 : index
    %c0_29 = arith.constant 0 : index
    %51 = vector.load %arg10[%c0_28, %c0_29] : memref<8x2xf32, #tpu.memory_space<vmem>>, vector<8x2xf32>
    tpu.vector_store %arg10[%c0_28, %c0_29], %50 {strides = array<i32>} : memref<8x2xf32, #tpu.memory_space<vmem>>, vector<8x2xf32>,
    return
  }
  func.func @transform_0(%arg0: i32) -> (i32, i32) {
    %c0_i32 = arith.constant 0 : i32
    %c0_i32_0 = arith.constant 0 : i32
    return %arg0, %c0_i32 : i32, i32
  }
  func.func @transform_1(%arg0: i32) -> (i32, i32) {
    %c0_i32 = arith.constant 0 : i32
    %c0_i32_0 = arith.constant 0 : i32
    %c0_i32_1 = arith.constant 0 : i32
    return %c0_i32, %c0_i32_0 : i32, i32
  }
  func.func @transform_2(%arg0: i32) -> (i32, i32) {
    %c0_i32 = arith.constant 0 : i32
    %c0_i32_0 = arith.constant 0 : i32
    %c0_i32_1 = arith.constant 0 : i32
    return %c0_i32, %c0_i32_0 : i32, i32
  }
  func.func @transform_3(%arg0: i32) -> (i32, i32) {
    %c0_i32 = arith.constant 0 : i32
    %c0_i32_0 = arith.constant 0 : i32
    %c0_i32_1 = arith.constant 0 : i32
    return %c0_i32, %c0_i32_0 : i32, i32
  }
  func.func @transform_4(%arg0: i32) -> (i32, i32) {
    %c0_i32 = arith.constant 0 : i32
    %c0_i32_0 = arith.constant 0 : i32
    %c0_i32_1 = arith.constant 0 : i32
    return %c0_i32, %c0_i32_0 : i32, i32
  }
  func.func @transform_5(%arg0: i32) -> (i32, i32) {
    %c0_i32 = arith.constant 0 : i32
    %c0_i32_0 = arith.constant 0 : i32
    %c0_i32_1 = arith.constant 0 : i32
    return %c0_i32, %c0_i32_0 : i32, i32
  }
  func.func @transform_6(%arg0: i32) -> (i32, i32) {
    %c0_i32 = arith.constant 0 : i32
    %c0_i32_0 = arith.constant 0 : i32
    %c0_i32_1 = arith.constant 0 : i32
    return %c0_i32, %c0_i32_0 : i32, i32
  }
  func.func @transform_7(%arg0: i32) -> (i32, i32) {
    %c0_i32 = arith.constant 0 : i32
    %c0_i32_0 = arith.constant 0 : i32
    %c0_i32_1 = arith.constant 0 : i32
    return %c0_i32, %c0_i32_0 : i32, i32
  }
  func.func @transform_8(%arg0: i32) -> (i32, i32) {
    %c0_i32 = arith.constant 0 : i32
    %c0_i32_0 = arith.constant 0 : i32
    %c0_i32_1 = arith.constant 0 : i32
    return %c0_i32, %c0_i32_0 : i32, i32
  }
  func.func @transform_9(%arg0: i32) -> (i32, i32) {
    %c0_i32 = arith.constant 0 : i32
    %c0_i32_0 = arith.constant 0 : i32
    return %arg0, %c0_i32 : i32, i32
  }
}

</mosaic_0001>

<bundles_post_ra>
// kernel: tpu_custom_call.1
= control target key start
LH: loop header
LB: loop body
LE: loop exit
PB: predicated region body
PF: predicated region fallthrough
CT: control target
= control target key end

     0   :  { %s1016_s0 = inlined_call_operand.vmem [shape: f32[8,16], index: 0, kind: input, shape index: {}]   ;;  %s1017_s1 = inlined_call_operand.vmem [shape: f32[16,512], index: 1, kind: input, shape index: {}]   ;;  %s1018_s2 = inlined_call_operand.vmem [shape: f32[1,512], index: 2, kind: input, shape index: {}]   ;;  %s1019_s3 = inlined_call_operand.hbm [shape: f32[512,128], index: 3, kind: input, shape index: {}]   ;;  %s1020_s4 = inlined_call_operand.vmem [shape: f32[1,128], index: 4, kind: input, shape index: {}]   ;;  %s1021_s5 = inlined_call_operand.vmem [shape: f32[128,32], index: 5, kind: input, shape index: {}]   ;;  %s1022_s6 = inlined_call_operand.vmem [shape: f32[1,32], index: 6, kind: input, shape index: {}]   ;;  %s1023_s7 = inlined_call_operand.vmem [shape: f32[1,32], index: 7, kind: input, shape index: {}]   ;;  %s1024_s8 = inlined_call_operand.<no memory space> [shape: f32[1,1], index: 8, kind: input, shape index: {}]   ;;  %s1025_s9 = inlined_call_operand.vmem [shape: f32[8,2], index: 9, kind: output, shape index: {}]  }
   0x1   :  { %v14_v0 = vstv %s1024_s8 }
   0x2   :  { %15 = vst [vmem:[#allocation2] sm:$0x1] %v14_v0 }
   0x3   :  { %16 = vsyncpa [#allocation4], 0  ;;  %s847_s11 = smov [#allocation3]   ;;  %s823_s15 = scalar_lea.hbm %s1019_s3, 8192 }
   0x4   :  { %s28_s12 = sshll.u32 %s847_s11, 4  ;;  %p824_p0 = scmp.ne.s32.totalorder %s1019_s3, %s823_s15  ;;  %s29_s12 = int_to_ptr.vmem [resolvable:$true] %s28_s12 }
   0x5   :  { %p827_p1 = scmp.lt.u32.totalorder %s823_s15, %s1019_s3 }
   0x7   :  { %p829_p2 = pnand %p827_p1, %p824_p0 }
   0x9   :  { %832 = shalt.err (!%p829_p2)
}
   0xa   :  { %s833_s8 = scalar_lea.vmem %s29_s12, 8192  ;;  %p838_p4 = scmp.lt.s32.totalorder %s29_s12, %s29_s12 }
   0xb   :  { %p834_p3 = scmp.ne.s32.totalorder %s29_s12, %s833_s8  ;;  %p839_p5 = scmp.lt.s32.totalorder %s833_s8, %s833_s8 }
   0xd   :  { %p840_p6 = por %p839_p5, %p838_p4 }
   0xf   :  { %p841_p7 = pnand %p840_p6, %p834_p3 }
  0x11   :  { %844 = shalt.err (!%p841_p7)
}
  0x12   :  { %s848_s20 = smov 128   ;;  %s849_s21 = smov 8  }
  0x13   :  { %34 = dma.hbm_to_vmem [thread:$0]  %s1019_s3, 8192, %s29_s12, [#allocation4], %s848_s20, %s848_s20, %s849_s21  }
  0x14   :  { %845 = dma.done.wait [#allocation4], 8192  }
  0x15   :  { %846 = vsyncadd [#allocation4], 4294959104  ;;  %v850_v1 = vmov 0.0   ;;  %v50_v2 = vld [vmem:[%s1017_s1 + $0x8] sm:$0xff]  ;;  %v49_v4 = vld [vmem:[%s1017_s1] sm:$0xff]  ;;  %vm79_vm0 = vcmask 130048  }
  0x16   :  { %147 = vmatprep.mubr.f32.mxu1 %v850_v1  ;;  %v54_v3 = vld [vmem:[%s1017_s1 + $0x28] sm:$0xff]  ;;  %v53_v6 = vld [vmem:[%s1017_s1 + $0x20] sm:$0xff]  ;;  %v52_v7 = vld [vmem:[%s1017_s1 + $0x18] sm:$0xff]  ;;  %vm852_vm1 = vmmov 0   ;;  %vm543_vm2 = vcmask 261120   ;;  %vm579_vm5 = vcmask 15360  }
  0x17   :  { %v714_v5 = vpack.c.bf16 %v54_v3, %v50_v2  ;;  %v716_v8 = vpack.c.bf16 %v53_v6, %v49_v4  ;;  %v48_v9 = vld [vmem:[%s1016_s0] sm:$0xff]  ;;  %v56_v10 = vld [vmem:[%s1017_s1 + $0x38] sm:$0xff]  ;;  %v51_v11 = vld [vmem:[%s1017_s1 + $0x10] sm:$0xff] }
  0x18   :  { %v55_v12 = vld [vmem:[%s1017_s1 + $0x30] sm:$0xff]  ;;  %v718_v13 = vpack.c.bf16 %v56_v10, %v52_v7  ;;  %v245_v14 = vld [vmem:[#allocation3 + $0x80] sm:$0xff]  ;;  %v248_v21 = vld [vmem:[#allocation3 + $0x98] sm:$0xff] }
  0x19   :  { %715 = vmatprep.subr.bf16.mxu1 %v714_v5  ;;  %v246_v15 = vld [vmem:[#allocation3 + $0x88] sm:$0xff]  ;;  %v229_v16 = vld [vmem:[#allocation3] sm:$0xff]  ;;  %v720_v17 = vpack.c.bf16 %v55_v12, %v51_v11  ;;  %v247_v20 = vld [vmem:[#allocation3 + $0x90] sm:$0xff] }
  0x1a   :  { %717 = vmatpush1.bf16.msra.mxu1 %v716_v8  ;;  %v722_v18 = vpack.c.bf16 %v246_v15, %v245_v14  ;;  %v230_v19 = vld [vmem:[#allocation3 + $0x8] sm:$0xff]  ;;  %v726_v23 = vpack.c.bf16 %v248_v21, %v247_v20  ;;  %v277_v24 = vld [vmem:[#allocation3 + $0x180] sm:$0xff]  ;;  %v231_v26 = vld [vmem:[#allocation3 + $0x10] sm:$0xff] }
  0x1b   :  { %719 = vmatprep.subr.bf16.mxu1 %v718_v13  ;;  %v724_v22 = vpack.c.bf16 %v230_v19, %v229_v16  ;;  %v278_v25 = vld [vmem:[#allocation3 + $0x188] sm:$0xff]  ;;  %v232_v28 = vld [vmem:[#allocation3 + $0x18] sm:$0xff]  ;;  %v261_v29 = vld [vmem:[#allocation3 + $0x100] sm:$0xff] }
  0x1c   :  { %723 = vmatprep.subr.bf16.mxu0 %v722_v18  ;;  %v754_v27 = vpack.c.bf16 %v278_v25, %v277_v24  ;;  %v262_v30 = vld [vmem:[#allocation3 + $0x108] sm:$0xff]  ;;  %v728_v31 = vpack.c.bf16 %v232_v28, %v231_v26  ;;  %v249_v32 = vld [vmem:[#allocation3 + $0xa0] sm:$0xff]  ;;  %v279_v34 = vld [vmem:[#allocation3 + $0x190] sm:$0xff] }
  0x1d   :  { %586 = vmatmul.mubr.msk.f32.vlgmr.msra.gmra.mrb[0].mxu1 %vm79_vm0, %v48_v9  ;;  %725 = vmatpush3.bf16.msra.mxu0 %v724_v22  ;;  %v250_v33 = vld [vmem:[#allocation3 + $0xa8] sm:$0xff]  ;;  %v756_v35 = vpack.c.bf16 %v262_v30, %v261_v29  ;;  %v280_v37 = vld [vmem:[#allocation3 + $0x198] sm:$0xff]  ;;  %v233_v38 = vld [vmem:[#allocation3 + $0x20] sm:$0xff] }
  0x1e   :  { %721 = vmatpush1.bf16.msra.mxu1 %v720_v17  ;;  %218 = vmatprep.mubr.f32.mxu1 %v850_v1  ;;  %v730_v36 = vpack.c.bf16 %v250_v33, %v249_v32  ;;  %v234_v39 = vld [vmem:[#allocation3 + $0x28] sm:$0xff]  ;;  %v758_v40 = vpack.c.bf16 %v280_v37, %v279_v34  ;;  %v263_v41 = vld [vmem:[#allocation3 + $0x110] sm:$0xff]  ;;  %v264_v42 = vld [vmem:[#allocation3 + $0x118] sm:$0xff] }
  0x1f   :  { %727 = vmatprep.subr.bf16.mxu0 %v726_v23  ;;  %755 = vmatprep.subr.bf16.mxu1 %v754_v27  ;;  %v251_v43 = vld [vmem:[#allocation3 + $0xb0] sm:$0xff]  ;;  %v252_v44 = vld [vmem:[#allocation3 + $0xb8] sm:$0xff]  ;;  %v281_v45 = vld [vmem:[#allocation3 + $0x1a0] sm:$0xff]  ;;  %v732_v47 = vpack.c.bf16 %v234_v39, %v233_v38  ;;  %v760_v48 = vpack.c.bf16 %v264_v42, %v263_v41 }
  0x20   :  { %v282_v46 = vld [vmem:[#allocation3 + $0x1a8] sm:$0xff]  ;;  %v734_v49 = vpack.c.bf16 %v252_v44, %v251_v43  ;;  %v235_v50 = vld [vmem:[#allocation3 + $0x30] sm:$0xff]  ;;  %v236_v51 = vld [vmem:[#allocation3 + $0x38] sm:$0xff] }
  0x21   :  { %587 = vmatmul.mubr.msk.f32.vlgmr.msra.gmra.mrb[2].mxu1 %vm79_vm0, %v48_v9  ;;  %729 = vmatpush3.bf16.msra.mxu0 %v728_v31  ;;  %v265_v52 = vld [vmem:[#allocation3 + $0x120] sm:$0xff]  ;;  %v762_v53 = vpack.c.bf16 %v282_v46, %v281_v45  ;;  %v266_v54 = vld [vmem:[#allocation3 + $0x128] sm:$0xff]  ;;  %v283_v57 = vld [vmem:[#allocation3 + $0x1b0] sm:$0xff]  ;;  %v736_v59 = vpack.c.bf16 %v236_v51, %v235_v50 }
  0x22   :  { %757 = vmatpush3.bf16.msra.mxu1 %v756_v35  ;;  %731 = vmatprep.subr.bf16.mxu0 %v730_v36  ;;  %v253_v55 = vld [vmem:[#allocation3 + $0xc0] sm:$0xff]  ;;  %v254_v56 = vld [vmem:[#allocation3 + $0xc8] sm:$0xff]  ;;  %v284_v58 = vld [vmem:[#allocation3 + $0x1b8] sm:$0xff]  ;;  %v764_v60 = vpack.c.bf16 %v266_v54, %v265_v52 }
  0x23   :  { %759 = vmatprep.subr.bf16.mxu1 %v758_v40  ;;  %v738_v61 = vpack.c.bf16 %v254_v56, %v253_v55  ;;  %v237_v62 = vld [vmem:[#allocation3 + $0x40] sm:$0xff]  ;;  %v238_v63 = vld [vmem:[#allocation3 + $0x48] sm:$0xff]  ;;  %v267_v0 = vld [vmem:[#allocation3 + $0x130] sm:$0xff]  ;;  %v766_v2 = vpack.c.bf16 %v284_v58, %v283_v57 }
  0x24   :  { %v268_v3 = vld [vmem:[#allocation3 + $0x138] sm:$0xff]  ;;  %v255_v4 = vld [vmem:[#allocation3 + $0xd0] sm:$0xff]  ;;  %v285_v6 = vld [vmem:[#allocation3 + $0x1c0] sm:$0xff]  ;;  %v740_v8 = vpack.c.bf16 %v238_v63, %v237_v62 }
  0x25   :  { %733 = vmatpush3.bf16.msra.mxu0 %v732_v47  ;;  %v256_v5 = vld [vmem:[#allocation3 + $0xd8] sm:$0xff]  ;;  %v286_v7 = vld [vmem:[#allocation3 + $0x1c8] sm:$0xff]  ;;  %v768_v9 = vpack.c.bf16 %v268_v3, %v267_v0  ;;  %v239_v11 = vld [vmem:[#allocation3 + $0x50] sm:$0xff] }
  0x26   :  { %761 = vmatpush3.bf16.msra.mxu1 %v760_v48  ;;  %735 = vmatprep.subr.bf16.mxu0 %v734_v49  ;;  %v742_v10 = vpack.c.bf16 %v256_v5, %v255_v4  ;;  %v240_v12 = vld [vmem:[#allocation3 + $0x58] sm:$0xff]  ;;  %v269_v13 = vld [vmem:[#allocation3 + $0x140] sm:$0xff]  ;;  %v770_v14 = vpack.c.bf16 %v286_v7, %v285_v6  ;;  %v270_v15 = vld [vmem:[#allocation3 + $0x148] sm:$0xff]  ;;  %v851_v48 = vmov 0.0|0.0   ;;  %v59_v49 = vlaneseq }
  0x27   :  { %763 = vmatprep.subr.bf16.mxu1 %v762_v53  ;;  %v257_v16 = vld [vmem:[#allocation3 + $0xe0] sm:$0xff]  ;;  %v258_v17 = vld [vmem:[#allocation3 + $0xe8] sm:$0xff]  ;;  %v287_v18 = vld [vmem:[#allocation3 + $0x1d0] sm:$0xff]  ;;  %v744_v20 = vpack.c.bf16 %v240_v12, %v239_v11  ;;  %v772_v21 = vpack.c.bf16 %v270_v15, %v269_v13 }
  0x28   :  { %v288_v19 = vld [vmem:[#allocation3 + $0x1d8] sm:$0xff]  ;;  %v746_v22 = vpack.c.bf16 %v258_v17, %v257_v16  ;;  %v241_v24 = vld [vmem:[#allocation3 + $0x60] sm:$0xff]  ;;  %v242_v25 = vld [vmem:[#allocation3 + $0x68] sm:$0xff]  ;;  %v60_v50 = vshrl.u32 %v59_v49, 7 }
  0x29   :  { %737 = vmatpush3.bf16.msra.mxu0 %v736_v59  ;;  %v774_v23 = vpack.c.bf16 %v288_v19, %v287_v18  ;;  %v271_v26 = vld [vmem:[#allocation3 + $0x150] sm:$0xff]  ;;  %v748_v27 = vpack.c.bf16 %v242_v25, %v241_v24  ;;  %v272_v28 = vld [vmem:[#allocation3 + $0x158] sm:$0xff]  ;;  %v289_v32 = vld [vmem:[#allocation3 + $0x1e0] sm:$0xff] }
  0x2a   :  { %765 = vmatpush3.bf16.msra.mxu1 %v764_v60  ;;  %739 = vmatprep.subr.bf16.mxu0 %v738_v61  ;;  %v776_v29 = vpack.c.bf16 %v272_v28, %v271_v26  ;;  %v259_v30 = vld [vmem:[#allocation3 + $0xf0] sm:$0xff]  ;;  %v260_v31 = vld [vmem:[#allocation3 + $0xf8] sm:$0xff]  ;;  %v290_v34 = vld [vmem:[#allocation3 + $0x1e8] sm:$0xff]  ;;  %v61_v51 = vsub.s32 0, %v60_v50  ;;  %v65_v53 = vsub.s32 1, %v60_v50  ;;  %v69_v55 = vsub.s32 2, %v60_v50 }
  0x2b   :  { %767 = vmatprep.subr.bf16.mxu1 %v766_v2  ;;  %v750_v33 = vpack.c.bf16 %v260_v31, %v259_v30  ;;  %v243_v35 = vld [vmem:[#allocation3 + $0x70] sm:$0xff]  ;;  %v244_v36 = vld [vmem:[#allocation3 + $0x78] sm:$0xff]  ;;  %v778_v37 = vpack.c.bf16 %v290_v34, %v289_v32  ;;  %v273_v39 = vld [vmem:[#allocation3 + $0x160] sm:$0xff]  ;;  %v73_v56 = vsub.s32 3, %v60_v50 }
  0x2c   :  { %v752_v38 = vpack.c.bf16 %v244_v36, %v243_v35  ;;  %v274_v40 = vld [vmem:[#allocation3 + $0x168] sm:$0xff]  ;;  %v291_v42 = vld [vmem:[#allocation3 + $0x1f0] sm:$0xff]  ;;  %v292_v43 = vld [vmem:[#allocation3 + $0x1f8] sm:$0xff] }
  0x2d   :  { %741 = vmatpush3.bf16.msra.mxu0 %v740_v8  ;;  %v780_v41 = vpack.c.bf16 %v274_v40, %v273_v39  ;;  %v782_v44 = vpack.c.bf16 %v292_v43, %v291_v42  ;;  %v275_v45 = vld [vmem:[#allocation3 + $0x170] sm:$0xff]  ;;  %v276_v46 = vld [vmem:[#allocation3 + $0x178] sm:$0xff]  ;;  %v442_v63 = vld [vmem:[%s1021_s5 + $0x8] sm:$0xff] }
  0x2e   :  { %769 = vmatpush3.bf16.msra.mxu1 %v768_v9  ;;  %743 = vmatprep.subr.bf16.mxu0 %v742_v10  ;;  %v784_v47 = vpack.c.bf16 %v276_v46, %v275_v45  ;;  %v57_v52 = vld [vmem:[%s1018_s2] sm:$0xf]  ;;  %v443_v9 = vld [vmem:[%s1021_s5 + $0x10] sm:$0xff]  ;;  %v444_v10 = vld [vmem:[%s1021_s5 + $0x18] sm:$0xff] }
  0x2f   :  { %771 = vmatprep.subr.bf16.mxu1 %v770_v14  ;;  %v62_v54 = vrot.slane %v57_v52, %v61_v51  ;;  %v66_v57 = vrot.slane %v57_v52, %v65_v53  ;;  %v70_v61 = vrot.slane %v57_v52, %v69_v55  ;;  %v441_v62 = vld [vmem:[%s1021_s5] sm:$0xff]  ;;  %v74_v0 = vrot.slane %v57_v52, %v73_v56  ;;  %v446_v16 = vld [vmem:[%s1021_s5 + $0x28] sm:$0xff]  ;;  %v447_v18 = vld [vmem:[%s1021_s5 + $0x30] sm:$0xff] }
  0x30   :  { %v787_v5 = vpack.c.bf16 %v442_v63, %v441_v62  ;;  %v790_v13 = vpack.c.bf16 %v444_v10, %v443_v9  ;;  %v445_v15 = vld [vmem:[%s1021_s5 + $0x20] sm:$0xff]  ;;  %v448_v19 = vld [vmem:[%s1021_s5 + $0x38] sm:$0xff]  ;;  %v451_v24 = vld [vmem:[%s1021_s5 + $0x50] sm:$0xff]  ;;  %v853_v51 = vmov 0  }
  0x31   :  { %745 = vmatpush3.bf16.msra.mxu0 %v744_v20  ;;  %v793_v17 = vpack.c.bf16 %v446_v16, %v445_v15  ;;  %v796_v20 = vpack.c.bf16 %v448_v19, %v447_v18  ;;  %v452_v25 = vld [vmem:[%s1021_s5 + $0x58] sm:$0xff]  ;;  %v454_v28 = vld [vmem:[%s1021_s5 + $0x68] sm:$0xff]  ;;  %v455_v30 = vld [vmem:[%s1021_s5 + $0x70] sm:$0xff]  ;;  %817 = vset.pattern.permute.xlu0 %v853_v51 }
  0x32   :  { %773 = vmatpush3.bf16.msra.mxu1 %v772_v21  ;;  %747 = vmatprep.subr.bf16.mxu0 %v746_v22  ;;  %v449_v21 = vld [vmem:[%s1021_s5 + $0x40] sm:$0xff]  ;;  %v450_v22 = vld [vmem:[%s1021_s5 + $0x48] sm:$0xff]  ;;  %v802_v26 = vpack.c.bf16 %v452_v25, %v451_v24  ;;  %v456_v31 = vld [vmem:[%s1021_s5 + $0x78] sm:$0xff] }
  0x33   :  { %775 = vmatprep.subr.bf16.mxu1 %v774_v23  ;;  %v799_v23 = vpack.c.bf16 %v450_v22, %v449_v21  ;;  %v808_v32 = vpack.c.bf16 %v456_v31, %v455_v30  ;;  %v588_v36 = vld [vmem:[%s1020_s4] ss:$0 sm:$0xff]  ;;  %818 = vset.pattern.permute.xlu1 %v853_v51 }
  0x34   :  { %v589_v43 = vld [vmem:[%s1022_s6] ss:$0 sm:$0xff] }
  0x35   :  { %749 = vmatpush3.bf16.msra.mxu0 %v748_v27  ;;  %v453_v27 = vld [vmem:[%s1021_s5 + $0x60] sm:$0xff] }
  0x36   :  { %777 = vmatpush3.bf16.msra.mxu1 %v776_v29  ;;  %751 = vmatprep.subr.bf16.mxu0 %v750_v33  ;;  %v805_v29 = vpack.c.bf16 %v454_v28, %v453_v27  ;;  %v590_v46 = vld [vmem:[%s1023_s7] ss:$0 sm:$0xff] }
  0x37   :  { %779 = vmatprep.subr.bf16.mxu1 %v778_v37  ;;  %v591_v52 = vld [vmem:[#allocation2] ss:$0 sm:$0xff] }
  0x39   :  { %753 = vmatpush3.bf16.msra.mxu0 %v752_v38 }
  0x3a   :  { %781 = vmatpush3.bf16.msra.mxu1 %v780_v41  ;;  %786 = vmatprep.subr.bf16.mxu0 %v851_v48 }
  0x3b   :  { %783 = vmatprep.subr.bf16.mxu1 %v782_v44 }
  0x3e   :  { %785 = vmatpush3.bf16.msra.mxu1 %v784_v47 }
  0xf0   :  { %v149_v58 = vpop.f32.mrb[0].mxu1 }
  0xf1   :  { %v150_v59 = vadd.f32 %v149_v58, %v62_v54  ;;  %v151_v60 = vpop.f32.mrb[1].mxu1 }
  0xf2   :  { %v152_v2 = vadd.f32 %v151_v60, %v66_v57 }
  0xf3   :  { %v225_v6 = vmax.f32 %v150_v59, 0.0 }
  0xf4   :  { %v220_v3 = vpop.f32.mrb[2].mxu1  ;;  %v226_v4 = vmax.f32 %v152_v2, 0.0 }
  0xf5   :  { %v221_v7 = vadd.f32 %v220_v3, %v70_v61  ;;  %v222_v8 = vpop.f32.mrb[3].mxu1 }
  0xf6   :  { %v223_v11 = vadd.f32 %v222_v8, %v74_v0  ;;  %364 = vmatprep.mubr.f32.mxu0 %v226_v4  ;;  %v565_v0 = vand.u32 127, %v59_v49 }
  0xf7   :  { %365 = vmatmul.mubr.f32.vlgmr.msra.gmra.mrb[0].mxu0 %v225_v6  ;;  %v227_v14 = vmax.f32 %v221_v7, 0.0 }
  0xf8   :  { %v228_v12 = vmax.f32 %v223_v11, 0.0  ;;  %788 = vmatpush3.bf16.msra.mxu0 %v787_v5  ;;  %711 = vmatprep.mubr.msk.f32.mxu0 %vm852_vm1, %v850_v1  ;;  %vm566_vm4 = vcmp.eq.s32.totalorder %v565_v0, 0 }
  0xf9   :  { %789 = vmatprep.subr.bf16.mxu0 %v851_v48 }
  0xfa   :  { %434 = vmatprep.mubr.f32.mxu1 %v228_v12 }
  0xfb   :  { %435 = vmatmul.mubr.f32.vlgmr.msra.gmra.mrb[4].mxu1 %v227_v14 }
  0xfc   :  { %791 = vmatpush3.bf16.msra.mxu0 %v790_v13 }
  0xfd   :  { %792 = vmatprep.subr.bf16.mxu0 %v851_v48 }
 0x100   :  { %794 = vmatpush3.bf16.msra.mxu0 %v793_v17 }
 0x101   :  { %795 = vmatprep.subr.bf16.mxu0 %v851_v48 }
 0x104   :  { %797 = vmatpush3.bf16.msra.mxu0 %v796_v20 }
 0x105   :  { %798 = vmatprep.subr.bf16.mxu0 %v851_v48 }
 0x108   :  { %800 = vmatpush3.bf16.msra.mxu0 %v799_v23 }
 0x109   :  { %801 = vmatprep.subr.bf16.mxu0 %v851_v48 }
 0x10c   :  { %803 = vmatpush3.bf16.msra.mxu0 %v802_v26 }
 0x10d   :  { %804 = vmatprep.subr.bf16.mxu0 %v851_v48 }
 0x110   :  { %806 = vmatpush3.bf16.msra.mxu0 %v805_v29 }
 0x111   :  { %807 = vmatprep.subr.bf16.mxu0 %v851_v48 }
 0x114   :  { %809 = vmatpush3.bf16.msra.mxu0 %v808_v32 }
 0x1ca   :  { %v624_v33 = vpop.f32.mrb[0].mxu0 }
 0x1cb   :  { %v625_v34 = vpop.f32.mrb[1].mxu0 }
 0x1cc   :  { %v626_v35 = vadd.f32 %v625_v34, %v624_v33 }
 0x1ce   :  { %v659_v37 = vpop.f32.mrb[4].mxu1  ;;  %v367_v39 = vadd.f32 %v626_v35, %v588_v36 }
 0x1cf   :  { %v660_v38 = vpop.f32.mrb[5].mxu1 }
 0x1d0   :  { %v661_v40 = vadd.f32 %v660_v38, %v659_v37 }
 0x1d2   :  { %v437_v41 = vadd.f32 %v661_v40, %v367_v39 }
 0x1d4   :  { %v440_v42 = vmax.f32 %v437_v41, 0.0 }
 0x1d6   :  { %712 = vmatmul.mubr.f32.vlgmr.msra.gmra.mrb[2].mxu0 %v440_v42 }
 0x2a9   :  { %v530_v44 = vpop.f32.mrb[2].mxu0 }
 0x2aa   :  { %v531_v1 = vadd.f32 %v589_v43, %v530_v44  ;;  %v713_v45 = vpop.f32.mrb[3].mxu0 }
 0x2ac   :  { %v534_v47 = vmax.f32 %v531_v1, 0.0 }
 0x2ae   :  { %v542_v48 = vmul.f32 %v590_v46, %v534_v47 }
 0x2b0   :  { %v544_v50 = vsel %vm543_vm2, %v542_v48, 0.0 }
 0x2b1   :  { %545 = vadd.xlane.f32.xlu0 %v544_v50 }
 0x33e   :  { %v546_v53 = vpop.xlane.xlu0 %545 }
 0x33f   :  { %v554_v54 = vadd.f32 %v591_v52, %v546_v53 }
 0x341   :  { %v555_v55 = vand.u32 2147483647, %v554_v54  ;;  %vm559_vm3 = vcmp.ge.f32.partialorder %v554_v54, 0.0 }
 0x343   :  { %v556_v56 = vsub.f32 0.0, %v555_v55 }
 0x345   :  { %v557_v57 = vmul.f32 1.442695, %v556_v56 }
 0x347   :  { %819 = vpow2.f32 %v557_v57 }
 0x351   :  { %v820_v58 = vpop.eup %819 }
 0x352   :  { %v561_v59 = vadd.f32 1.0, %v820_v58  ;;  %v560_v61 = vsel %vm559_vm3, 1.0, %v820_v58 }
 0x354   :  { %821 = vrcp.f32 %v561_v59 }
 0x35e   :  { %v822_v60 = vpop.eup %821 }
 0x35f   :  { %v563_v62 = vmul.f32 %v822_v60, %v560_v61 }
 0x361   :  { %570 = vperm.xlu0 %817, %v563_v62   ;;  %v567_v63 = vsub.f32 1.0, %v563_v62 }
 0x363   :  { %575 = vperm.xlu1 %818, %v567_v63  }
 0x3e0   :  { %v571_v2 = vpop.permute.xlu0 %570 }
 0x3e2   :  { %v576_v3 = vpop.permute.xlu1 %575 }
 0x3e3   :  { %v578_v4 = vsel %vm566_vm4, %v571_v2, %v576_v3 }
 0x3e4   :  { %580 = vst.msk [vmem:[%s1025_s9] sm:$0xff] %vm579_vm5, %v578_v4 }
 0x3e5   :  { %585 = vsyncpa [#allocation4], 1 }

</bundles_post_ra>
